<compile_context>
chip_gen: v7x
topology: tpu7x:2x2x1
jax: 0.10.0
libtpu: 0.0.40
codegen_flags: <defaults>
</compile_context>

<pallas_src>
import jax
import jax.numpy as jnp
import numpy as np
from jax.experimental import pallas as pl
from jax.experimental.pallas import tpu as pltpu

# ---- hyper-parameters (DIM matches the torch default; K scaled down) ----
DIM = 128            # feature dim (torch default 128)
EMBED = 128          # base-encoder embedding size
K_QUEUE = 1024       # queue size (torch default 65536; small for the demo)
TK = 256             # queue tile (rows) per grid step -- multiple of 128
M_MOMENTUM = 0.999   # key-encoder momentum
TEMPERATURE = 0.07   # softmax temperature


# --------------------------- kernel helpers ----------------------------------

def _encode_project_normalize(x, enc_w, enc_b, proj_w, proj_b):
    """relu(x@We+be) -> y = h@Wp+bp -> y / max(||y||, eps). bf16 MXU, f32 acc."""
    h = jnp.dot(x.astype(jnp.bfloat16), enc_w.astype(jnp.bfloat16),
                preferred_element_type=jnp.float32) + enc_b
    h = jnp.maximum(h, 0.0)
    y = jnp.dot(h.astype(jnp.bfloat16), proj_w.astype(jnp.bfloat16),
                preferred_element_type=jnp.float32) + proj_b
    nsq = jnp.sum(y * y, axis=1, keepdims=True)
    return y * jax.lax.rsqrt(jnp.maximum(nsq, 1e-24))   # == y / max(||y||, 1e-12)


# ------------------- stage 1: EMA + both branches + enqueue ------------------

def _ema_encode_enqueue_kernel(
        # inputs
        ptr_ref,                                   # SMEM (1,) int32
        xq_ref, xk_ref,                            # flattened images (N, F) f32
        ewq_ref, ebq_ref, pwq_ref, pbq_ref,        # query params (f32)
        ewk_ref, ebk_ref, pwk_ref, pbk_ref,        # key params pre-EMA (f32)
        queue_hbm_ref,                             # (K, DIM) bf16, HBM (pl.ANY)
        # outputs
        q_out_ref,                                 # (N, DIM) bf16
        ewk_out_ref, ebk_out_ref, pwk_out_ref, pbk_out_ref,   # aliased key params
        queue_out_ref,                             # (K, DIM) bf16, HBM, aliased
        # scratch
        k_vmem, dma_sem):
    del queue_hbm_ref                              # same buffer as queue_out_ref
    n = xq_ref.shape[0]
    m = M_MOMENTUM

    # ---- momentum (EMA) update of key params, kept in f32 ----
    ewk = m * ewk_ref[...] + (1.0 - m) * ewq_ref[...]
    ebk = m * ebk_ref[...] + (1.0 - m) * ebq_ref[...]
    pwk = m * pwk_ref[...] + (1.0 - m) * pwq_ref[...]
    pbk = m * pbk_ref[...] + (1.0 - m) * pbq_ref[...]
    ewk_out_ref[...] = ewk
    ebk_out_ref[...] = ebk
    pwk_out_ref[...] = pwk
    pbk_out_ref[...] = pbk

    # ---- query branch (current q params) and key branch (EMA'd k params) ----
    q = _encode_project_normalize(xq_ref[...], ewq_ref[...], ebq_ref[...],
                                  pwq_ref[...], pbq_ref[...])
    k = _encode_project_normalize(xk_ref[...], ewk, ebk, pwk, pbk)
    q_out_ref[...] = q.astype(q_out_ref.dtype)
    k_vmem[...] = k.astype(k_vmem.dtype)

    # ---- dequeue & enqueue: DMA only the n new key rows into the HBM queue ----
    ptr = ptr_ref[0]
    cp = pltpu.make_async_copy(k_vmem, queue_out_ref.at[pl.ds(ptr, n), :],
                               dma_sem.at[0])
    cp.start()
    cp.wait()


# ------------------- stage 2: K-tiled logits & targets -----------------------

def _logits_targets_kernel(q_ref, lab_ref, queue_ref, lqueue_ref,
                           logits_ref, targets_ref):
    # logits tile = q @ queue_tile^T / T   (bf16 operands, f32 MXU accumulation)
    s = jax.lax.dot_general(
        q_ref[...], queue_ref[...],
        dimension_numbers=(((1,), (1,)), ((), ())),
        preferred_element_type=jnp.float32)
    logits_ref[...] = s * (1.0 / TEMPERATURE)

    # targets tile = (labels == label_queue_tile) & (labels != -1)
    lab = lab_ref[...]            # (N, 1) int32
    lq = lqueue_ref[...]          # (1, TK) int32
    targets_ref[...] = jnp.logical_and(lab == lq, lab != -1).astype(jnp.float32)


# ------------------- inference path (encoder_q only) -------------------------

def _encoder_only_kernel(x_ref, w_ref, b_ref, o_ref):
    h = jnp.dot(x_ref[...].astype(jnp.bfloat16), w_ref[...].astype(jnp.bfloat16),
                preferred_element_type=jnp.float32) + b_ref[...]
    o_ref[...] = jnp.maximum(h, 0.0)


def _encoder_only(x, w, b):
    n = x.shape[0]
    return pl.pallas_call(
        _encoder_only_kernel,
        out_shape=jax.ShapeDtypeStruct((n, w.shape[1]), jnp.float32),
    )(x, w, b)


# --------------------------- wrappers ----------------------------------------

def unimoco_forward(params, state, im_q, im_k=None, labels=None):
    """Training: returns (logits [N,K], targets [N,K], new_params, new_state).
    Inference (im_k is None and labels is None): returns encoder_q features."""
    n = im_q.shape[0]
    xq = im_q.reshape(n, -1)

    if im_k is None and labels is None:
        return _encoder_only(xq, params['q']['enc_w'], params['q']['enc_b'])

    assert K_QUEUE % n == 0, "queue size must be divisible by batch size"
    assert K_QUEUE % TK == 0
    xk = im_k.reshape(n, -1)
    pq, pk = params['q'], params['k']
    ptr = int(state['ptr'])
    ptr_arr = jnp.asarray([ptr], dtype=jnp.int32)
    labels_i32 = labels.astype(jnp.int32)

    smem = pl.BlockSpec(memory_space=pltpu.MemorySpace.SMEM)
    vmem = pl.BlockSpec(memory_space=pltpu.MemorySpace.VMEM)
    anymem = pl.BlockSpec(memory_space=pl.ANY)

    # ---------------- stage 1: EMA + branches + queue enqueue ----------------
    stage1_out_shape = (
        jax.ShapeDtypeStruct((n, DIM), jnp.bfloat16),                 # q (normalized)
        jax.ShapeDtypeStruct(pk['enc_w'].shape, jnp.float32),         # new enc_w_k
        jax.ShapeDtypeStruct(pk['enc_b'].shape, jnp.float32),         # new enc_b_k
        jax.ShapeDtypeStruct(pk['proj_w'].shape, jnp.float32),        # new proj_w_k
        jax.ShapeDtypeStruct(pk['proj_b'].shape, jnp.float32),        # new proj_b_k
        jax.ShapeDtypeStruct(state['queue'].shape, state['queue'].dtype),  # new queue
    )
    stage1 = pl.pallas_call(
        _ema_encode_enqueue_kernel,
        out_shape=stage1_out_shape,
        in_specs=[smem] + [vmem] * 10 + [anymem],
        out_specs=(vmem, vmem, vmem, vmem, vmem, anymem),
        scratch_shapes=[pltpu.VMEM((n, DIM), jnp.bfloat16),
                        pltpu.SemaphoreType.DMA((1,))],
        # key params and queue are updated in place (no extra HBM buffers/copies)
        input_output_aliases={7: 1, 8: 2, 9: 3, 10: 4, 11: 5},
    )
    q, ewk, ebk, pwk, pbk, queue_new = stage1(
        ptr_arr, xq, xk,
        pq['enc_w'], pq['enc_b'], pq['proj_w'], pq['proj_b'],
        pk['enc_w'], pk['enc_b'], pk['proj_w'], pk['proj_b'],
        state['queue'])

    # label-queue enqueue: n int32 values out of K -- negligible vs the bf16 key
    # queue, so a plain XLA dynamic-update-slice (no tiny lane-offset DMA needed).
    lqueue_new = jax.lax.dynamic_update_slice(
        state['label_queue'], labels_i32[None, :], (0, ptr))

    # ---------------- stage 2: K-tiled logits & targets ----------------------
    labels_col = labels_i32.reshape(n, 1)
    num_tiles = K_QUEUE // TK
    stage2 = pl.pallas_call(
        _logits_targets_kernel,
        out_shape=(jax.ShapeDtypeStruct((n, K_QUEUE), jnp.float32),   # logits
                   jax.ShapeDtypeStruct((n, K_QUEUE), jnp.float32)),  # targets
        grid=(num_tiles,),
        in_specs=[pl.BlockSpec((n, DIM), lambda j: (0, 0)),           # q (resident)
                  pl.BlockSpec((n, 1), lambda j: (0, 0)),             # labels (resident)
                  pl.BlockSpec((TK, DIM), lambda j: (j, 0)),          # queue tile
                  pl.BlockSpec((1, TK), lambda j: (0, j))],           # label-queue tile
        out_specs=(pl.BlockSpec((n, TK), lambda j: (0, j)),
                   pl.BlockSpec((n, TK), lambda j: (0, j))),
        compiler_params=pltpu.CompilerParams(
            dimension_semantics=("parallel",),
            vmem_limit_bytes=32 * 1024 * 1024),
    )
    logits, targets = stage2(q, labels_col, queue_new, lqueue_new)

    new_params = {'q': pq,
                  'k': {'enc_w': ewk, 'enc_b': ebk, 'proj_w': pwk, 'proj_b': pbk}}
    new_state = {'queue': queue_new, 'label_queue': lqueue_new,
                 'ptr': (ptr + n) % K_QUEUE}
    return logits, targets, new_params, new_state


# --------------------------- model setup -------------------------------------

def init_unimoco(key, in_features):
    k1, k2, k3, k4, k5 = jax.random.split(key, 5)
    scale_e = 1.0 / np.sqrt(in_features)
    scale_p = 1.0 / np.sqrt(EMBED)
    params_q = {
        'enc_w': jax.random.uniform(k1, (in_features, EMBED), jnp.float32,
                                    -scale_e, scale_e),
        'enc_b': jax.random.uniform(k2, (1, EMBED), jnp.float32, -scale_e, scale_e),
        'proj_w': jax.random.uniform(k3, (EMBED, DIM), jnp.float32,
                                     -scale_p, scale_p),
        'proj_b': jax.random.uniform(k4, (1, DIM), jnp.float32, -scale_p, scale_p),
    }
    # key params are independent copies of query params (torch copy_ semantics)
    params_k = {kk: jnp.array(vv) for kk, vv in params_q.items()}
    # queue stored row-major (K, DIM), unit-normalized per row, bf16 at rest
    queue = jax.random.normal(k5, (K_QUEUE, DIM), jnp.float32)
    queue = queue * jax.lax.rsqrt(
        jnp.maximum(jnp.sum(queue * queue, axis=1, keepdims=True), 1e-24))
    state = {'queue': queue.astype(jnp.bfloat16),
             'label_queue': jnp.full((1, K_QUEUE), -1, dtype=jnp.int32),
             'ptr': 0}
    return {'q': params_q, 'k': params_k}, state


# --------------------------- plain-JAX reference ------------------------------

def _ref_forward(params, state, im_q, im_k, labels):
    """Reference with the same bf16-operand / f32-accumulate math as the kernels."""
    n = im_q.shape[0]
    xq = im_q.reshape(n, -1)
    xk = im_k.reshape(n, -1)
    m = M_MOMENTUM
    pq = params['q']
    pk = {kk: m * params['k'][kk] + (1.0 - m) * pq[kk] for kk in params['k']}

    def branch(x, p):
        h = jnp.dot(x.astype(jnp.bfloat16), p['enc_w'].astype(jnp.bfloat16),
                    preferred_element_type=jnp.float32) + p['enc_b']
        h = jnp.maximum(h, 0.0)
        y = jnp.dot(h.astype(jnp.bfloat16), p['proj_w'].astype(jnp.bfloat16),
                    preferred_element_type=jnp.float32) + p['proj_b']
        return y * jax.lax.rsqrt(jnp.maximum(jnp.sum(y * y, 1, keepdims=True), 1e-24))

    q = branch(xq, pq).astype(jnp.bfloat16)
    k = branch(xk, pk).astype(jnp.bfloat16)
    ptr = int(state['ptr'])
    lab = labels.astype(jnp.int32)
    queue = state['queue'].at[ptr:ptr + n, :].set(k)
    lqueue = state['label_queue'].at[0, ptr:ptr + n].set(lab)
    logits = jax.lax.dot_general(q, queue, (((1,), (1,)), ((), ())),
                                 preferred_element_type=jnp.float32) / TEMPERATURE
    targets = ((lab[:, None] == lqueue[0][None, :]) &
               (lab[:, None] != -1)).astype(jnp.float32)
    return logits, targets, pk, queue, lqueue


# --------------------------- main ---------------------------------------------

if __name__ == "__main__":
    key = jax.random.PRNGKey(0)
    k_im1, k_im2, k_par = jax.random.split(key, 3)

    N, C, H, W = 8, 4, 16, 16
    im_q = jax.random.normal(k_im1, (N, C, H, W), jnp.float32)
    im_k = jax.random.normal(k_im2, (N, C, H, W), jnp.float32)
    labels = jnp.array([3, 1, 2, -1, 3, 0, 1, -1], dtype=jnp.int32)

    params, state = init_unimoco(k_par, C * H * W)

    # inference path: forward(im_q) == encoder_q(im_q)
    feat = unimoco_forward(params, state, im_q)
    jax.block_until_ready(feat)
    assert feat.shape == (N, EMBED) and feat.dtype == jnp.float32

    # training path
    logits, targets, new_params, new_state = unimoco_forward(
        params, state, im_q, im_k, labels)
    jax.block_until_ready((logits, targets, new_params, new_state))

    assert logits.shape == (N, K_QUEUE) and logits.dtype == jnp.float32
    assert targets.shape == (N, K_QUEUE) and targets.dtype == jnp.float32

    # --- exact targets check against the updated label queue ---
    lq = np.asarray(new_state['label_queue']).reshape(-1)
    lab = np.asarray(labels)
    ref_targets_np = ((lab[:, None] == lq[None, :]) &
                      (lab[:, None] != -1)).astype(np.float32)
    assert np.array_equal(np.asarray(targets), ref_targets_np)

    # --- full comparison against a plain-JAX reference of the same math ---
    ref_logits, ref_targets, ref_pk, ref_queue, ref_lqueue = _ref_forward(
        params, state, im_q, im_k, labels)
    assert np.array_equal(np.asarray(targets), np.asarray(ref_targets))
    assert np.array_equal(np.asarray(new_state['label_queue']),
                          np.asarray(ref_lqueue))
    assert np.allclose(np.asarray(new_state['queue'].astype(jnp.float32)),
                       np.asarray(ref_queue.astype(jnp.float32)),
                       rtol=1e-2, atol=2e-2)
    assert np.allclose(np.asarray(logits), np.asarray(ref_logits),
                       rtol=1e-2, atol=3e-2)
    for name in ('enc_w', 'enc_b', 'proj_w', 'proj_b'):
        assert np.allclose(np.asarray(new_params['k'][name]),
                           np.asarray(ref_pk[name]), rtol=1e-6, atol=1e-6)
    assert np.isfinite(np.asarray(logits)).all()
    assert new_state['ptr'] == N

    print("KERNEL_OK")
</pallas_src>

<mosaic_0001>
module attributes {stable_mosaic.version = 11 : i64} {
  func.func @_encoder_only_kernel(%arg0: memref<8x1024xf32, #tpu.memory_space<vmem>>, %arg1: memref<1024x128xf32, #tpu.memory_space<vmem>>, %arg2: memref<1x128xf32, #tpu.memory_space<vmem>>, %arg3: memref<8x128xf32, #tpu.memory_space<vmem>>) attributes {dimension_semantics = [], scalar_prefetch = 0 : i64, scratch_operands = 0 : i64, tpu.core_type = #tpu.core_type<tc>} {
    %c0 = arith.constant 0 : index
    %c0_0 = arith.constant 0 : index
    %0 = vector.load %arg0[%c0, %c0_0] : memref<8x1024xf32, #tpu.memory_space<vmem>>, vector<8x1024xf32>
    %1 = arith.truncf %0 : vector<8x1024xf32> to vector<8x1024xbf16>
    %c0_1 = arith.constant 0 : index
    %c0_2 = arith.constant 0 : index
    %2 = vector.load %arg1[%c0_1, %c0_2] : memref<1024x128xf32, #tpu.memory_space<vmem>>, vector<1024x128xf32>
    %3 = arith.truncf %2 : vector<1024x128xf32> to vector<1024x128xbf16>
    %cst = arith.constant dense<0.000000e+00> : vector<8x128xf32>
    %4 = tpu.matmul %1, %3, %cst {dimension_numbers = #tpu.dot_dimension_numbers<[1], [0], [0], [1], [0, 0, 1, 1], [], []>} : vector<8x1024xbf16>, vector<1024x128xbf16>, vector<8x128xf32> -> vector<8x128xf32>
    %c0_3 = arith.constant 0 : index
    %c0_4 = arith.constant 0 : index
    %5 = vector.load %arg2[%c0_3, %c0_4] : memref<1x128xf32, #tpu.memory_space<vmem>>, vector<1x128xf32>
    %6 = vector.broadcast %5 : vector<1x128xf32> to vector<8x128xf32>
    %7 = arith.addf %4, %6 : vector<8x128xf32>
    %cst_5 = arith.constant 0.000000e+00 : f32
    %8 = vector.broadcast %cst_5 : f32 to vector<8x128xf32>
    %9 = arith.maximumf %7, %8 : vector<8x128xf32>
    %c0_6 = arith.constant 0 : index
    %c0_7 = arith.constant 0 : index
    %10 = vector.load %arg3[%c0_6, %c0_7] : memref<8x128xf32, #tpu.memory_space<vmem>>, vector<8x128xf32>
    tpu.vector_store %arg3[%c0_6, %c0_7], %9 {strides = array<i32>} : memref<8x128xf32, #tpu.memory_space<vmem>>, vector<8x128xf32>,
    return
  }
}

</mosaic_0001>

<bundles_post_ra>
// kernel: tpu_custom_call.1
= control target key start
LH: loop header
LB: loop body
LE: loop exit
PB: predicated region body
PF: predicated region fallthrough
CT: control target
= control target key end

     0   :  { %8 = vsyncpa [#allocation3], 0  ;;  %s672_s0 = inlined_call_operand.hbm [shape: f32[8,1024], index: 0, kind: input, shape index: {}]   ;;  %s673_s1 = inlined_call_operand.hbm [shape: f32[1024,128], index: 1, kind: input, shape index: {}]   ;;  %s674_s2 = inlined_call_operand.vmem [shape: f32[1,128], index: 2, kind: input, shape index: {}]   ;;  %s675_s3 = inlined_call_operand.hbm [shape: f32[8,128], index: 3, kind: output, shape index: {}]  }
   0x1   :  { %9 = vsyncpa [#allocation6], 0 }
   0x2   :  { %10 = vsyncpa [#allocation4], 0  ;;  %s601_s12 = smov [#allocation2]   ;;  %s602_s14 = smov [#allocation5]  }
   0x3   :  { %s17_s13 = sshll.u32 %s601_s12, 4  ;;  %s26_s15 = sshll.u32 %s602_s14, 4  ;;  %s18_s13 = int_to_ptr.vmem [resolvable:$true] %s17_s13  ;;  %s626_s15 = int_to_ptr.vmem [resolvable:$true] %s26_s15 }
   0x4   :  { %s529_s18 = scalar_lea.hbm %s672_s0, 1024 }
   0x5   :  { %p530_p0 = scmp.ne.s32.totalorder %s672_s0, %s529_s18  ;;  %p533_p1 = scmp.lt.u32.totalorder %s529_s18, %s672_s0 }
   0x7   :  { %p535_p2 = pnand %p533_p1, %p530_p0 }
   0x9   :  { %538 = shalt.err (!%p535_p2)
}
   0xa   :  { %s539_s23 = scalar_lea.vmem %s18_s13, 1024  ;;  %p544_p4 = scmp.lt.s32.totalorder %s18_s13, %s18_s13 }
   0xb   :  { %p540_p3 = scmp.ne.s32.totalorder %s18_s13, %s539_s23  ;;  %p545_p5 = scmp.lt.s32.totalorder %s539_s23, %s539_s23 }
   0xd   :  { %p546_p6 = por %p545_p5, %p544_p4 }
   0xf   :  { %p547_p7 = pnand %p546_p6, %p540_p3 }
  0x11   :  { %550 = shalt.err (!%p547_p7)
}
  0x12   :  { %20 = dma.hbm_to_vmem [thread:$0]  %s672_s0, 1024, %s18_s13, [#allocation3]  }
  0x13   :  { %s551_s28 = scalar_lea.hbm %s673_s1, 16384 }
  0x14   :  { %p552_p8 = scmp.ne.s32.totalorder %s673_s1, %s551_s28  ;;  %p555_p9 = scmp.lt.u32.totalorder %s551_s28, %s673_s1 }
  0x16   :  { %p557_p10 = pnand %p555_p9, %p552_p8 }
  0x18   :  { %560 = shalt.err (!%p557_p10)
}
  0x19   :  { %s561_s6 = scalar_lea.vmem %s626_s15, 16384  ;;  %p566_p12 = scmp.lt.s32.totalorder %s626_s15, %s626_s15 }
  0x1a   :  { %p562_p11 = scmp.ne.s32.totalorder %s626_s15, %s561_s6  ;;  %p567_p13 = scmp.lt.s32.totalorder %s561_s6, %s561_s6 }
  0x1c   :  { %p568_p0 = por %p567_p13, %p566_p12 }
  0x1e   :  { %p569_p1 = pnand %p568_p0, %p562_p11 }
  0x20   :  { %572 = shalt.err (!%p569_p1)
}
  0x21   :  { %s603_s0 = smov 128   ;;  %s604_s7 = smov 8  }
  0x22   :  { %32 = dma.hbm_to_vmem [thread:$0]  %s673_s1, 16384, %s626_s15, [#allocation6], %s603_s0, %s603_s0, %s604_s7  }
  0x23   :  { %595 = dma.done.wait [#allocation3], 1024  }
  0x24   :  { %596 = vsyncadd [#allocation3], 4294966272 }
  0x25   :  { %597 = dma.done.wait [#allocation6], 16384  }
  0x26   :  { %598 = vsyncadd [#allocation6], 4294950912  ;;  %v74_v0 = vld [vmem:[#allocation5 + $0x80] sm:$0xff]  ;;  %v75_v1 = vld [vmem:[#allocation5 + $0x88] sm:$0xff] }
  0x27   :  { %v106_v2 = vld [vmem:[#allocation5 + $0x180] sm:$0xff]  ;;  %v194_v3 = vpack.c.bf16 %v75_v1, %v74_v0  ;;  %v107_v4 = vld [vmem:[#allocation5 + $0x188] sm:$0xff]  ;;  %v76_v11 = vld [vmem:[#allocation5 + $0x90] sm:$0xff] }
  0x28   :  { %v58_v5 = vld [vmem:[#allocation5] sm:$0xff]  ;;  %v59_v6 = vld [vmem:[#allocation5 + $0x8] sm:$0xff]  ;;  %v210_v7 = vpack.c.bf16 %v107_v4, %v106_v2  ;;  %v77_v13 = vld [vmem:[#allocation5 + $0x98] sm:$0xff] }
  0x29   :  { %v186_v8 = vpack.c.bf16 %v59_v6, %v58_v5  ;;  %v90_v9 = vld [vmem:[#allocation5 + $0x100] sm:$0xff]  ;;  %v91_v10 = vld [vmem:[#allocation5 + $0x108] sm:$0xff]  ;;  %436 = vmatprep.subr.bf16.mxu0 %v194_v3  ;;  %v108_v14 = vld [vmem:[#allocation5 + $0x190] sm:$0xff]  ;;  %v195_v16 = vpack.c.bf16 %v77_v13, %v76_v11 }
  0x2a   :  { %v202_v12 = vpack.c.bf16 %v91_v10, %v90_v9  ;;  %v109_v15 = vld [vmem:[#allocation5 + $0x198] sm:$0xff]  ;;  %458 = vmatprep.subr.bf16.mxu1 %v210_v7  ;;  %v60_v18 = vld [vmem:[#allocation5 + $0x10] sm:$0xff]  ;;  %v78_v23 = vld [vmem:[#allocation5 + $0xa0] sm:$0xff] }
  0x2b   :  { %437 = vmatpush3.bf16.msra.mxu0 %v186_v8  ;;  %v211_v17 = vpack.c.bf16 %v109_v15, %v108_v14  ;;  %v61_v19 = vld [vmem:[#allocation5 + $0x18] sm:$0xff]  ;;  %v92_v20 = vld [vmem:[#allocation5 + $0x110] sm:$0xff]  ;;  %v79_v24 = vld [vmem:[#allocation5 + $0xa8] sm:$0xff] }
  0x2c   :  { %459 = vmatpush3.bf16.msra.mxu1 %v202_v12  ;;  %v187_v21 = vpack.c.bf16 %v61_v19, %v60_v18  ;;  %v93_v22 = vld [vmem:[#allocation5 + $0x118] sm:$0xff]  ;;  %438 = vmatprep.subr.bf16.mxu0 %v195_v16  ;;  %v196_v26 = vpack.c.bf16 %v79_v24, %v78_v23  ;;  %v110_v27 = vld [vmem:[#allocation5 + $0x1a0] sm:$0xff]  ;;  %v111_v28 = vld [vmem:[#allocation5 + $0x1a8] sm:$0xff] }
  0x2d   :  { %460 = vmatprep.subr.bf16.mxu1 %v211_v17  ;;  %v203_v25 = vpack.c.bf16 %v93_v22, %v92_v20  ;;  %v62_v29 = vld [vmem:[#allocation5 + $0x20] sm:$0xff]  ;;  %v212_v30 = vpack.c.bf16 %v111_v28, %v110_v27  ;;  %v63_v31 = vld [vmem:[#allocation5 + $0x28] sm:$0xff]  ;;  %v80_v35 = vld [vmem:[#allocation5 + $0xb0] sm:$0xff] }
  0x2e   :  { %v94_v32 = vld [vmem:[#allocation5 + $0x120] sm:$0xff]  ;;  %v95_v33 = vld [vmem:[#allocation5 + $0x128] sm:$0xff]  ;;  %v188_v34 = vpack.c.bf16 %v63_v31, %v62_v29  ;;  %v81_v36 = vld [vmem:[#allocation5 + $0xb8] sm:$0xff] }
  0x2f   :  { %439 = vmatpush3.bf16.msra.mxu0 %v187_v21  ;;  %v112_v37 = vld [vmem:[#allocation5 + $0x1b0] sm:$0xff]  ;;  %v204_v38 = vpack.c.bf16 %v95_v33, %v94_v32  ;;  %v197_v39 = vpack.c.bf16 %v81_v36, %v80_v35  ;;  %v113_v40 = vld [vmem:[#allocation5 + $0x1b8] sm:$0xff]  ;;  %v82_v46 = vld [vmem:[#allocation5 + $0xc0] sm:$0xff] }
  0x30   :  { %461 = vmatpush3.bf16.msra.mxu1 %v203_v25  ;;  %440 = vmatprep.subr.bf16.mxu0 %v196_v26  ;;  %v64_v41 = vld [vmem:[#allocation5 + $0x30] sm:$0xff]  ;;  %v65_v42 = vld [vmem:[#allocation5 + $0x38] sm:$0xff]  ;;  %v213_v43 = vpack.c.bf16 %v113_v40, %v112_v37  ;;  %v83_v47 = vld [vmem:[#allocation5 + $0xc8] sm:$0xff] }
  0x31   :  { %462 = vmatprep.subr.bf16.mxu1 %v212_v30  ;;  %v96_v44 = vld [vmem:[#allocation5 + $0x130] sm:$0xff]  ;;  %v97_v45 = vld [vmem:[#allocation5 + $0x138] sm:$0xff]  ;;  %v114_v48 = vld [vmem:[#allocation5 + $0x1c0] sm:$0xff]  ;;  %v189_v50 = vpack.c.bf16 %v65_v42, %v64_v41  ;;  %v198_v52 = vpack.c.bf16 %v83_v47, %v82_v46 }
  0x32   :  { %v115_v49 = vld [vmem:[#allocation5 + $0x1c8] sm:$0xff]  ;;  %v205_v51 = vpack.c.bf16 %v97_v45, %v96_v44  ;;  %v66_v53 = vld [vmem:[#allocation5 + $0x40] sm:$0xff]  ;;  %v84_v58 = vld [vmem:[#allocation5 + $0xd0] sm:$0xff] }
  0x33   :  { %441 = vmatpush3.bf16.msra.mxu0 %v188_v34  ;;  %v67_v54 = vld [vmem:[#allocation5 + $0x48] sm:$0xff]  ;;  %v98_v55 = vld [vmem:[#allocation5 + $0x140] sm:$0xff]  ;;  %v214_v56 = vpack.c.bf16 %v115_v49, %v114_v48  ;;  %v85_v59 = vld [vmem:[#allocation5 + $0xd8] sm:$0xff] }
  0x34   :  { %463 = vmatpush3.bf16.msra.mxu1 %v204_v38  ;;  %442 = vmatprep.subr.bf16.mxu0 %v197_v39  ;;  %v99_v57 = vld [vmem:[#allocation5 + $0x148] sm:$0xff]  ;;  %v116_v60 = vld [vmem:[#allocation5 + $0x1d0] sm:$0xff]  ;;  %v117_v61 = vld [vmem:[#allocation5 + $0x1d8] sm:$0xff]  ;;  %v190_v62 = vpack.c.bf16 %v67_v54, %v66_v53  ;;  %v199_v0 = vpack.c.bf16 %v85_v59, %v84_v58 }
  0x35   :  { %464 = vmatprep.subr.bf16.mxu1 %v213_v43  ;;  %v206_v63 = vpack.c.bf16 %v99_v57, %v98_v55  ;;  %v68_v1 = vld [vmem:[#allocation5 + $0x50] sm:$0xff]  ;;  %v69_v2 = vld [vmem:[#allocation5 + $0x58] sm:$0xff]  ;;  %v215_v4 = vpack.c.bf16 %v117_v61, %v116_v60  ;;  %v86_v6 = vld [vmem:[#allocation5 + $0xe0] sm:$0xff] }
  0x36   :  { %v100_v3 = vld [vmem:[#allocation5 + $0x150] sm:$0xff]  ;;  %v101_v5 = vld [vmem:[#allocation5 + $0x158] sm:$0xff]  ;;  %v87_v7 = vld [vmem:[#allocation5 + $0xe8] sm:$0xff]  ;;  %v191_v10 = vpack.c.bf16 %v69_v2, %v68_v1 }
  0x37   :  { %443 = vmatpush3.bf16.msra.mxu0 %v189_v50  ;;  %v118_v8 = vld [vmem:[#allocation5 + $0x1e0] sm:$0xff]  ;;  %v119_v9 = vld [vmem:[#allocation5 + $0x1e8] sm:$0xff]  ;;  %v207_v13 = vpack.c.bf16 %v101_v5, %v100_v3  ;;  %v200_v14 = vpack.c.bf16 %v87_v7, %v86_v6  ;;  %v45_v17 = vld [vmem:[#allocation2 + $0x18] sm:$0xff] }
  0x38   :  { %465 = vmatpush3.bf16.msra.mxu1 %v205_v51  ;;  %444 = vmatprep.subr.bf16.mxu0 %v198_v52  ;;  %v70_v11 = vld [vmem:[#allocation5 + $0x60] sm:$0xff]  ;;  %v71_v12 = vld [vmem:[#allocation5 + $0x68] sm:$0xff]  ;;  %v216_v18 = vpack.c.bf16 %v119_v9, %v118_v8  ;;  %v88_v20 = vld [vmem:[#allocation5 + $0xf0] sm:$0xff]  ;;  %v53_v23 = vpack.c.bf16 %v45_v17, %v45_v17 }
  0x39   :  { %466 = vmatprep.subr.bf16.mxu1 %v214_v56  ;;  %v102_v15 = vld [vmem:[#allocation5 + $0x160] sm:$0xff]  ;;  %v43_v16 = vld [vmem:[#allocation2 + $0x8] sm:$0xff]  ;;  %v89_v21 = vld [vmem:[#allocation5 + $0xf8] sm:$0xff]  ;;  %v192_v26 = vpack.c.bf16 %v71_v12, %v70_v11 }
  0x3a   :  { %v103_v19 = vld [vmem:[#allocation5 + $0x168] sm:$0xff]  ;;  %v51_v22 = vpack.c.bf16 %v43_v16, %v43_v16  ;;  %v120_v24 = vld [vmem:[#allocation5 + $0x1f0] sm:$0xff]  ;;  %v121_v25 = vld [vmem:[#allocation5 + $0x1f8] sm:$0xff]  ;;  %v201_v28 = vpack.c.bf16 %v89_v21, %v88_v20  ;;  %329 = vmatprep.mubr.bf16.mxu1 %v53_v23 }
  0x3b   :  { %445 = vmatpush3.bf16.msra.mxu0 %v190_v62  ;;  %v208_v27 = vpack.c.bf16 %v103_v19, %v102_v15  ;;  %v72_v29 = vld [vmem:[#allocation5 + $0x70] sm:$0xff]  ;;  %v73_v30 = vld [vmem:[#allocation5 + $0x78] sm:$0xff]  ;;  %v217_v32 = vpack.c.bf16 %v121_v25, %v120_v24  ;;  %v138_v34 = vld [vmem:[#allocation5 + $0x280] sm:$0xff] }
  0x3c   :  { %467 = vmatpush3.bf16.msra.mxu1 %v206_v63  ;;  %446 = vmatprep.subr.bf16.mxu0 %v199_v0  ;;  %v104_v31 = vld [vmem:[#allocation5 + $0x170] sm:$0xff]  ;;  %v105_v33 = vld [vmem:[#allocation5 + $0x178] sm:$0xff]  ;;  %v139_v35 = vld [vmem:[#allocation5 + $0x288] sm:$0xff]  ;;  %v193_v38 = vpack.c.bf16 %v73_v30, %v72_v29 }
  0x3d   :  { %468 = vmatprep.subr.bf16.mxu1 %v215_v4  ;;  %289 = vmatprep.mubr.bf16.mxu0 %v51_v22  ;;  %v170_v36 = vld [vmem:[#allocation5 + $0x380] sm:$0xff]  ;;  %v171_v37 = vld [vmem:[#allocation5 + $0x388] sm:$0xff]  ;;  %v44_v40 = vld [vmem:[#allocation2 + $0x10] sm:$0xff]  ;;  %v209_v41 = vpack.c.bf16 %v105_v33, %v104_v31  ;;  %v226_v42 = vpack.c.bf16 %v139_v35, %v138_v34 }
  0x3e   :  { %v42_v39 = vld [vmem:[#allocation2] sm:$0xff]  ;;  %v123_v44 = vld [vmem:[#allocation5 + $0x208] sm:$0xff]  ;;  %v242_v46 = vpack.c.bf16 %v171_v37, %v170_v36  ;;  %v140_v48 = vld [vmem:[#allocation5 + $0x290] sm:$0xff]  ;;  %v52_v53 = vpack.c.bf16 %v44_v40, %v44_v40 }
  0x3f   :  { %447 = vmatpush3.bf16.msra.mxu0 %v191_v10  ;;  %v122_v43 = vld [vmem:[#allocation5 + $0x200] sm:$0xff]  ;;  %v155_v47 = vld [vmem:[#allocation5 + $0x308] sm:$0xff]  ;;  %v141_v49 = vld [vmem:[#allocation5 + $0x298] sm:$0xff]  ;;  %v50_v50 = vpack.c.bf16 %v42_v39, %v42_v39 }
  0x40   :  { %469 = vmatpush3.bf16.msra.mxu1 %v207_v13  ;;  %448 = vmatprep.subr.bf16.mxu0 %v200_v14  ;;  %v154_v45 = vld [vmem:[#allocation5 + $0x300] sm:$0xff]  ;;  %v172_v51 = vld [vmem:[#allocation5 + $0x390] sm:$0xff]  ;;  %v173_v52 = vld [vmem:[#allocation5 + $0x398] sm:$0xff]  ;;  %v218_v54 = vpack.c.bf16 %v123_v44, %v122_v43  ;;  %v227_v56 = vpack.c.bf16 %v141_v49, %v140_v48 }
  0x41   :  { %470 = vmatprep.subr.bf16.mxu1 %v216_v18  ;;  %v234_v55 = vpack.c.bf16 %v155_v47, %v154_v45  ;;  %v124_v57 = vld [vmem:[#allocation5 + $0x210] sm:$0xff]  ;;  %v125_v58 = vld [vmem:[#allocation5 + $0x218] sm:$0xff]  ;;  %v243_v60 = vpack.c.bf16 %v173_v52, %v172_v51  ;;  %v142_v62 = vld [vmem:[#allocation5 + $0x2a0] sm:$0xff] }
  0x42   :  { %v156_v59 = vld [vmem:[#allocation5 + $0x310] sm:$0xff]  ;;  %v157_v61 = vld [vmem:[#allocation5 + $0x318] sm:$0xff]  ;;  %v143_v63 = vld [vmem:[#allocation5 + $0x2a8] sm:$0xff]  ;;  %v219_v2 = vpack.c.bf16 %v125_v58, %v124_v57 }
  0x43   :  { %449 = vmatpush3.bf16.msra.mxu0 %v192_v26  ;;  %v174_v0 = vld [vmem:[#allocation5 + $0x3a0] sm:$0xff]  ;;  %v175_v1 = vld [vmem:[#allocation5 + $0x3a8] sm:$0xff]  ;;  %v235_v3 = vpack.c.bf16 %v157_v61, %v156_v59  ;;  %v228_v4 = vpack.c.bf16 %v143_v63, %v142_v62  ;;  %v144_v10 = vld [vmem:[#allocation5 + $0x2b0] sm:$0xff] }
  0x44   :  { %471 = vmatpush3.bf16.msra.mxu1 %v208_v27  ;;  %450 = vmatprep.subr.bf16.mxu0 %v201_v28  ;;  %v126_v5 = vld [vmem:[#allocation5 + $0x220] sm:$0xff]  ;;  %v127_v6 = vld [vmem:[#allocation5 + $0x228] sm:$0xff]  ;;  %v244_v8 = vpack.c.bf16 %v175_v1, %v174_v0  ;;  %v145_v11 = vld [vmem:[#allocation5 + $0x2b8] sm:$0xff] }
  0x45   :  { %472 = vmatprep.subr.bf16.mxu1 %v217_v32  ;;  %v158_v7 = vld [vmem:[#allocation5 + $0x320] sm:$0xff]  ;;  %v159_v9 = vld [vmem:[#allocation5 + $0x328] sm:$0xff]  ;;  %v176_v12 = vld [vmem:[#allocation5 + $0x3b0] sm:$0xff]  ;;  %v220_v14 = vpack.c.bf16 %v127_v6, %v126_v5  ;;  %v229_v17 = vpack.c.bf16 %v145_v11, %v144_v10 }
  0x46   :  { %v177_v13 = vld [vmem:[#allocation5 + $0x3b8] sm:$0xff]  ;;  %v128_v15 = vld [vmem:[#allocation5 + $0x230] sm:$0xff]  ;;  %v236_v16 = vpack.c.bf16 %v159_v9, %v158_v7  ;;  %v146_v22 = vld [vmem:[#allocation5 + $0x2c0] sm:$0xff] }
  0x47   :  { %451 = vmatpush3.bf16.msra.mxu0 %v193_v38  ;;  %v129_v18 = vld [vmem:[#allocation5 + $0x238] sm:$0xff]  ;;  %v160_v19 = vld [vmem:[#allocation5 + $0x330] sm:$0xff]  ;;  %v245_v21 = vpack.c.bf16 %v177_v13, %v176_v12  ;;  %v147_v23 = vld [vmem:[#allocation5 + $0x2c8] sm:$0xff] }
  0x48   :  { %473 = vmatpush3.bf16.msra.mxu1 %v209_v41  ;;  %480 = vmatprep.subr.bf16.mxu0 %v226_v42  ;;  %v161_v20 = vld [vmem:[#allocation5 + $0x338] sm:$0xff]  ;;  %v178_v24 = vld [vmem:[#allocation5 + $0x3c0] sm:$0xff]  ;;  %v179_v25 = vld [vmem:[#allocation5 + $0x3c8] sm:$0xff]  ;;  %v221_v26 = vpack.c.bf16 %v129_v18, %v128_v15  ;;  %v230_v30 = vpack.c.bf16 %v147_v23, %v146_v22 }
  0x49   :  { %502 = vmatprep.subr.bf16.mxu1 %v242_v46  ;;  %v237_v27 = vpack.c.bf16 %v161_v20, %v160_v19  ;;  %v47_v28 = vld [vmem:[#allocation2 + $0x28] sm:$0xff]  ;;  %v49_v29 = vld [vmem:[#allocation2 + $0x38] sm:$0xff]  ;;  %v130_v31 = vld [vmem:[#allocation5 + $0x240] sm:$0xff]  ;;  %v246_v36 = vpack.c.bf16 %v179_v25, %v178_v24 }
  0x4a   :  { %290 = vmatmul.mubr.bf16.vlgmr.msra.gmra.mrb[0].mxu0 %v50_v50  ;;  %v131_v32 = vld [vmem:[#allocation5 + $0x248] sm:$0xff]  ;;  %v162_v33 = vld [vmem:[#allocation5 + $0x340] sm:$0xff]  ;;  %v55_v34 = vpack.c.bf16 %v47_v28, %v47_v28  ;;  %v57_v35 = vpack.c.bf16 %v49_v29, %v49_v29  ;;  %v148_v38 = vld [vmem:[#allocation5 + $0x2d0] sm:$0xff] }
  0x4b   :  { %330 = vmatmul.mubr.bf16.vlgmr.msra.gmra.mrb[0].mxu1 %v52_v53  ;;  %481 = vmatpush3.bf16.msra.mxu0 %v218_v54  ;;  %v163_v37 = vld [vmem:[#allocation5 + $0x348] sm:$0xff]  ;;  %v149_v39 = vld [vmem:[#allocation5 + $0x2d8] sm:$0xff]  ;;  %v180_v40 = vld [vmem:[#allocation5 + $0x3d0] sm:$0xff]  ;;  %v222_v42 = vpack.c.bf16 %v131_v32, %v130_v31 }
  0x4c   :  { %503 = vmatpush3.bf16.msra.mxu1 %v234_v55  ;;  %482 = vmatprep.subr.bf16.mxu0 %v227_v56  ;;  %v181_v41 = vld [vmem:[#allocation5 + $0x3d8] sm:$0xff]  ;;  %v238_v43 = vpack.c.bf16 %v163_v37, %v162_v33  ;;  %v231_v44 = vpack.c.bf16 %v149_v39, %v148_v38  ;;  %v132_v45 = vld [vmem:[#allocation5 + $0x250] sm:$0xff]  ;;  %v150_v50 = vld [vmem:[#allocation5 + $0x2e0] sm:$0xff] }
  0x4d   :  { %504 = vmatprep.subr.bf16.mxu1 %v243_v60  ;;  %369 = vmatprep.mubr.bf16.mxu0 %v55_v34  ;;  %v133_v46 = vld [vmem:[#allocation5 + $0x258] sm:$0xff]  ;;  %v164_v47 = vld [vmem:[#allocation5 + $0x350] sm:$0xff]  ;;  %v247_v48 = vpack.c.bf16 %v181_v41, %v180_v40  ;;  %v151_v51 = vld [vmem:[#allocation5 + $0x2e8] sm:$0xff] }
  0x4e   :  { %409 = vmatprep.mubr.bf16.mxu1 %v57_v35  ;;  %v165_v49 = vld [vmem:[#allocation5 + $0x358] sm:$0xff]  ;;  %v182_v52 = vld [vmem:[#allocation5 + $0x3e0] sm:$0xff]  ;;  %v183_v53 = vld [vmem:[#allocation5 + $0x3e8] sm:$0xff]  ;;  %v223_v54 = vpack.c.bf16 %v133_v46, %v132_v45  ;;  %v232_v56 = vpack.c.bf16 %v151_v51, %v150_v50 }
  0x4f   :  { %483 = vmatpush3.bf16.msra.mxu0 %v219_v2  ;;  %v239_v55 = vpack.c.bf16 %v165_v49, %v164_v47  ;;  %v134_v57 = vld [vmem:[#allocation5 + $0x260] sm:$0xff]  ;;  %v135_v58 = vld [vmem:[#allocation5 + $0x268] sm:$0xff]  ;;  %v248_v60 = vpack.c.bf16 %v183_v53, %v182_v52  ;;  %v152_v62 = vld [vmem:[#allocation5 + $0x2f0] sm:$0xff] }
  0x50   :  { %505 = vmatpush3.bf16.msra.mxu1 %v235_v3  ;;  %484 = vmatprep.subr.bf16.mxu0 %v228_v4  ;;  %v166_v59 = vld [vmem:[#allocation5 + $0x360] sm:$0xff]  ;;  %v167_v61 = vld [vmem:[#allocation5 + $0x368] sm:$0xff]  ;;  %v153_v63 = vld [vmem:[#allocation5 + $0x2f8] sm:$0xff]  ;;  %v224_v2 = vpack.c.bf16 %v135_v58, %v134_v57 }
  0x51   :  { %506 = vmatprep.subr.bf16.mxu1 %v244_v8  ;;  %v184_v0 = vld [vmem:[#allocation5 + $0x3f0] sm:$0xff]  ;;  %v185_v1 = vld [vmem:[#allocation5 + $0x3f8] sm:$0xff]  ;;  %v240_v3 = vpack.c.bf16 %v167_v61, %v166_v59  ;;  %v233_v4 = vpack.c.bf16 %v153_v63, %v152_v62  ;;  %v46_v11 = vld [vmem:[#allocation2 + $0x20] sm:$0xff] }
  0x52   :  { %v136_v5 = vld [vmem:[#allocation5 + $0x270] sm:$0xff]  ;;  %v137_v6 = vld [vmem:[#allocation5 + $0x278] sm:$0xff]  ;;  %v249_v7 = vpack.c.bf16 %v185_v1, %v184_v0  ;;  %v435_v18 = vld [vmem:[%s674_s2] ss:$0 sm:$0xff]  ;;  %s605_s2 = smov [#allocation7]  }
  0x53   :  { %485 = vmatpush3.bf16.msra.mxu0 %v220_v14  ;;  %v168_v8 = vld [vmem:[#allocation5 + $0x370] sm:$0xff]  ;;  %v169_v9 = vld [vmem:[#allocation5 + $0x378] sm:$0xff]  ;;  %v225_v10 = vpack.c.bf16 %v137_v6, %v136_v5  ;;  %v54_v14 = vpack.c.bf16 %v46_v11, %v46_v11  ;;  %s425_s11 = sshll.u32 %s605_s2, 4  ;;  %s426_s11 = int_to_ptr.vmem [resolvable:$true] %s425_s11 }
  0x54   :  { %507 = vmatpush3.bf16.msra.mxu1 %v236_v16  ;;  %486 = vmatprep.subr.bf16.mxu0 %v229_v17  ;;  %v241_v12 = vpack.c.bf16 %v169_v9, %v168_v8  ;;  %v48_v13 = vld [vmem:[#allocation2 + $0x30] sm:$0xff]  ;;  %s573_s12 = scalar_lea.vmem %s426_s11, 128  ;;  %p578_p3 = scmp.lt.s32.totalorder %s426_s11, %s426_s11 }
  0x55   :  { %508 = vmatprep.subr.bf16.mxu1 %v245_v21  ;;  %v56_v15 = vpack.c.bf16 %v48_v13, %v48_v13  ;;  %p574_p2 = scmp.ne.s32.totalorder %s426_s11, %s573_s12  ;;  %p579_p4 = scmp.lt.s32.totalorder %s573_s12, %s573_s12 }
  0x57   :  { %487 = vmatpush3.bf16.msra.mxu0 %v221_v26  ;;  %p580_p5 = por %p579_p4, %p578_p3 }
  0x58   :  { %509 = vmatpush3.bf16.msra.mxu1 %v237_v27  ;;  %488 = vmatprep.subr.bf16.mxu0 %v230_v30 }
  0x59   :  { %510 = vmatprep.subr.bf16.mxu1 %v246_v36  ;;  %p581_p6 = pnand %p580_p5, %p574_p2 }
  0x5b   :  { %489 = vmatpush3.bf16.msra.mxu0 %v222_v42 }
  0x5c   :  { %511 = vmatpush3.bf16.msra.mxu1 %v238_v43  ;;  %490 = vmatprep.subr.bf16.mxu0 %v231_v44 }
  0x5d   :  { %512 = vmatprep.subr.bf16.mxu1 %v247_v48 }
  0x5f   :  { %491 = vmatpush3.bf16.msra.mxu0 %v223_v54 }
  0x60   :  { %513 = vmatpush3.bf16.msra.mxu1 %v239_v55  ;;  %492 = vmatprep.subr.bf16.mxu0 %v232_v56 }
  0x61   :  { %514 = vmatprep.subr.bf16.mxu1 %v248_v60 }
  0x63   :  { %493 = vmatpush3.bf16.msra.mxu0 %v224_v2 }
  0x64   :  { %515 = vmatpush3.bf16.msra.mxu1 %v240_v3  ;;  %494 = vmatprep.subr.bf16.mxu0 %v233_v4 }
  0x65   :  { %516 = vmatprep.subr.bf16.mxu1 %v249_v7 }
  0x67   :  { %495 = vmatpush3.bf16.msra.mxu0 %v225_v10 }
  0x68   :  { %517 = vmatpush3.bf16.msra.mxu1 %v241_v12 }
  0x6a   :  { %370 = vmatmul.mubr.bf16.vlgmr.msra.gmra.mrb[4].mxu0 %v54_v14 }
  0x6b   :  { %410 = vmatmul.mubr.bf16.vlgmr.msra.gmra.mrb[4].mxu1 %v56_v15 }
 0x11d   :  { %v452_v16 = vpop.f32.mrb[0].mxu0 }
 0x11e   :  { %v474_v17 = vpop.f32.mrb[0].mxu1  ;;  %v453_v19 = vpop.f32.mrb[1].mxu0 }
 0x11f   :  { %v454_v20 = vadd.f32 %v453_v19, %v452_v16  ;;  %v475_v21 = vpop.f32.mrb[1].mxu1  ;;  %v455_v22 = vpop.f32.mrb[2].mxu0 }
 0x120   :  { %v476_v23 = vadd.f32 %v475_v21, %v474_v17  ;;  %v477_v24 = vpop.f32.mrb[2].mxu1  ;;  %v456_v25 = vpop.f32.mrb[3].mxu0 }
 0x121   :  { %v292_v26 = vadd.f32 %v454_v20, %v435_v18  ;;  %v478_v27 = vpop.f32.mrb[3].mxu1 }
 0x123   :  { %v332_v28 = vadd.f32 %v476_v23, %v292_v26 }
 0x13d   :  { %v496_v29 = vpop.f32.mrb[4].mxu0 }
 0x13e   :  { %v518_v30 = vpop.f32.mrb[4].mxu1  ;;  %v497_v31 = vpop.f32.mrb[5].mxu0 }
 0x13f   :  { %v498_v32 = vadd.f32 %v497_v31, %v496_v29  ;;  %v519_v33 = vpop.f32.mrb[5].mxu1  ;;  %v499_v34 = vpop.f32.mrb[6].mxu0 }
 0x140   :  { %v520_v35 = vadd.f32 %v519_v33, %v518_v30  ;;  %v521_v36 = vpop.f32.mrb[6].mxu1  ;;  %v500_v37 = vpop.f32.mrb[7].mxu0 }
 0x141   :  { %v372_v38 = vadd.f32 %v498_v32, %v332_v28  ;;  %v522_v39 = vpop.f32.mrb[7].mxu1 }
 0x143   :  { %v412_v40 = vadd.f32 %v520_v35, %v372_v38 }
 0x145   :  { %v417_v41 = vmax.f32 %v412_v40, 0.0 }
 0x147   :  { %418 = vst [vmem:[#allocation7] sm:$0xff] %v417_v41 }
 0x148   :  { %584 = shalt.err (!%p581_p6)
}
 0x149   :  { %s585_s15 = scalar_lea.hbm %s675_s3, 128 }
 0x14a   :  { %p586_p7 = scmp.ne.s32.totalorder %s675_s3, %s585_s15  ;;  %p589_p8 = scmp.lt.u32.totalorder %s585_s15, %s675_s3 }
 0x14c   :  { %p591_p9 = pnand %p589_p8, %p586_p7 }
 0x14e   :  { %594 = shalt.err (!%p591_p9)
}
 0x14f   :  { %428 = dma.vmem_to_hbm [thread:$0]  %s426_s11, 128, %s675_s3, [#allocation4]  }
 0x150   :  { %599 = dma.done.wait [#allocation4], 128  }
 0x151   :  { %600 = vsyncadd [#allocation4], 4294967168 }
 0x152   :  { %432 = vsyncpa [#allocation3], 1 }
 0x153   :  { %433 = vsyncpa [#allocation6], 1 }
 0x154   :  { %434 = vsyncpa [#allocation4], 1 }

</bundles_post_ra>
